<compile_context>
chip_gen: v7x
topology: tpu7x:2x2x1
jax: 0.10.0
libtpu: 0.0.40
codegen_flags: <defaults>
</compile_context>

<pallas_src>
import jax
import jax.numpy as jnp
from jax.experimental import pallas as pl
from jax.experimental.pallas import tpu as pltpu


def gru_kernel(gi_ref, whh_t_ref, bhn_ref, hn_ref):
    """Recurrent part only.  gi_ref: (T, B, 3H) precomputed input gates
    (with b_ih + b_hr + b_hz already folded in), whh_t_ref: (H, 3H),
    bhn_ref: (1, H) = b_hn.  Writes final hidden state hn_ref: (B, H)."""
    T, B, _ = gi_ref.shape
    H = hn_ref.shape[-1]

    # Loop-invariant loads / broadcasts hoisted out of the (unrolled) time loop.
    whh_t = whh_t_ref[...]                                   # (H, 3H) f32
    b_hn = jnp.broadcast_to(bhn_ref[...], (B, H))            # (B, H)  f32

    h0 = jnp.zeros((B, H), jnp.float32)                      # PyTorch default h0 = 0

    def step(t, h):
        gi_t = gi_ref[t]                                     # (B, 3H) — VPU adds only
        gh = jnp.dot(h, whh_t, preferred_element_type=jnp.float32)  # (B, 3H) MXU
        r = jax.nn.sigmoid(gi_t[:, 0:H] + gh[:, 0:H])
        z = jax.nn.sigmoid(gi_t[:, H:2 * H] + gh[:, H:2 * H])
        n = jnp.tanh(gi_t[:, 2 * H:3 * H] + r * (gh[:, 2 * H:3 * H] + b_hn))
        return (1.0 - z) * n + z * h

    h_final = jax.lax.fori_loop(0, T, step, h0, unroll=True)
    hn_ref[...] = h_final.astype(hn_ref.dtype)


def gru_forward(x, w_ih, w_hh, b_ih, b_hh):
    """x: [B, T, I]; w_ih: [3H, I]; w_hh: [3H, H]; biases: [3H]. Returns hn [B, H]."""
    B, T, I = x.shape
    H = w_hh.shape[1]

    if T == 0:
        # Empty sequence: PyTorch would return h0 (= zeros).
        return jnp.zeros((B, H), x.dtype)

    # ---- Hoisted input projection for ALL time steps (one batched matmul). ----
    # Fold b_ih plus the r/z parts of b_hh; only b_hn must stay inside r*(...).
    bias_fold = (b_ih.astype(jnp.float32)
                 + jnp.concatenate([b_hh[:2 * H].astype(jnp.float32),
                                    jnp.zeros((H,), jnp.float32)]))
    gi = jnp.einsum('bti,gi->tbg',
                    x.astype(jnp.float32),
                    w_ih.astype(jnp.float32)) + bias_fold[None, None, :]   # (T, B, 3H)

    whh_t = jnp.transpose(w_hh, (1, 0)).astype(jnp.float32)   # (H, 3H)
    bhn = b_hh[2 * H:].reshape(1, H).astype(jnp.float32)      # (1, H)

    # Single kernel invocation: whole recurrence lives in VMEM (gi is tiny here).
    return pl.pallas_call(
        gru_kernel,
        out_shape=jax.ShapeDtypeStruct((B, H), x.dtype),
        in_specs=[
            pl.BlockSpec(memory_space=pltpu.MemorySpace.VMEM),  # gi (T, B, 3H)
            pl.BlockSpec(memory_space=pltpu.MemorySpace.VMEM),  # W_hh^T (H, 3H)
            pl.BlockSpec(memory_space=pltpu.MemorySpace.VMEM),  # b_hn (1, H)
        ],
        out_specs=pl.BlockSpec(memory_space=pltpu.MemorySpace.VMEM),
    )(gi, whh_t, bhn)


def gru_reference(x, w_ih, w_hh, b_ih, b_hh):
    """Pure-JAX reference (same PyTorch GRU math) for a correctness check."""
    B, T, I = x.shape
    H = w_hh.shape[1]

    def step(h, x_t):
        gi = x_t @ w_ih.T + b_ih
        gh = h @ w_hh.T + b_hh
        r = jax.nn.sigmoid(gi[:, 0:H] + gh[:, 0:H])
        z = jax.nn.sigmoid(gi[:, H:2 * H] + gh[:, H:2 * H])
        n = jnp.tanh(gi[:, 2 * H:3 * H] + r * gh[:, 2 * H:3 * H])
        h_new = (1.0 - z) * n + z * h
        return h_new, None

    h0 = jnp.zeros((B, H), jnp.float32)
    hn, _ = jax.lax.scan(step, h0, jnp.transpose(x, (1, 0, 2)))
    return hn


if __name__ == "__main__":
    # Small shapes consistent with the module: batch=2, seq=8, input_dim=8, hidden=32.
    B, T, INPUT_DIM, HIDDEN_DIM = 2, 8, 8, 32

    key = jax.random.PRNGKey(0)
    kx, k1, k2, k3, k4 = jax.random.split(key, 5)

    # Deterministic parameter init, mimicking nn.GRU's U(-1/sqrt(H), 1/sqrt(H)).
    bound = 1.0 / jnp.sqrt(jnp.float32(HIDDEN_DIM))
    x = jax.random.normal(kx, (B, T, INPUT_DIM), dtype=jnp.float32)
    w_ih = jax.random.uniform(k1, (3 * HIDDEN_DIM, INPUT_DIM), jnp.float32, -bound, bound)
    w_hh = jax.random.uniform(k2, (3 * HIDDEN_DIM, HIDDEN_DIM), jnp.float32, -bound, bound)
    b_ih = jax.random.uniform(k3, (3 * HIDDEN_DIM,), jnp.float32, -bound, bound)
    b_hh = jax.random.uniform(k4, (3 * HIDDEN_DIM,), jnp.float32, -bound, bound)

    hn = gru_forward(x, w_ih, w_hh, b_ih, b_hh)
    hn = jax.block_until_ready(hn)

    hn_ref = gru_reference(x, w_ih, w_hh, b_ih, b_hh)
    assert hn.shape == (B, HIDDEN_DIM)
    assert jnp.allclose(hn, hn_ref, atol=1e-5, rtol=1e-5), "mismatch vs JAX reference"

    print("KERNEL_OK")
</pallas_src>

<mosaic_0001>
module attributes {stable_mosaic.version = 11 : i64} {
  func.func @gru_kernel(%arg0: memref<8x2x96xf32, #tpu.memory_space<vmem>>, %arg1: memref<32x96xf32, #tpu.memory_space<vmem>>, %arg2: memref<1x32xf32, #tpu.memory_space<vmem>>, %arg3: memref<2x32xf32, #tpu.memory_space<vmem>>) attributes {dimension_semantics = [], scalar_prefetch = 0 : i64, scratch_operands = 0 : i64, tpu.core_type = #tpu.core_type<tc>} {
    %c0 = arith.constant 0 : index
    %c0_0 = arith.constant 0 : index
    %0 = vector.load %arg1[%c0, %c0_0] : memref<32x96xf32, #tpu.memory_space<vmem>>, vector<32x96xf32>
    %c0_1 = arith.constant 0 : index
    %c0_2 = arith.constant 0 : index
    %1 = vector.load %arg2[%c0_1, %c0_2] : memref<1x32xf32, #tpu.memory_space<vmem>>, vector<1x32xf32>
    %2 = vector.shape_cast %1 : vector<1x32xf32> to vector<1x32xf32>
    %3 = vector.broadcast %2 : vector<1x32xf32> to vector<2x32xf32>
    %cst = arith.constant 0.000000e+00 : f32
    %4 = vector.broadcast %cst : f32 to vector<2x32xf32>
    %c0_i32 = arith.constant 0 : i32
    %5 = arith.index_cast %c0_i32 : i32 to index
    %c0_3 = arith.constant 0 : index
    %c0_4 = arith.constant 0 : index
    %6 = vector.load %arg0[%5, %c0_3, %c0_4] : memref<8x2x96xf32, #tpu.memory_space<vmem>>, vector<1x2x96xf32>
    %7 = vector.shape_cast %6 : vector<1x2x96xf32> to vector<2x96xf32>
    %cst_5 = arith.constant dense<0.000000e+00> : vector<2x96xf32>
    %8 = tpu.matmul %4, %0, %cst_5 {dimension_numbers = #tpu.dot_dimension_numbers<[1], [0], [0], [1], [0, 0, 1, 1], [], []>} : vector<2x32xf32>, vector<32x96xf32>, vector<2x96xf32> -> vector<2x96xf32>
    %9 = vector.extract_strided_slice %7 {offsets = [0, 0], sizes = [2, 32], strides = [1, 1]} : vector<2x96xf32> to vector<2x32xf32>
    %10 = vector.extract_strided_slice %8 {offsets = [0, 0], sizes = [2, 32], strides = [1, 1]} : vector<2x96xf32> to vector<2x32xf32>
    %11 = arith.addf %9, %10 : vector<2x32xf32>
    %12 = arith.negf %11 : vector<2x32xf32>
    %13 = math.exp %12 : vector<2x32xf32>
    %cst_6 = arith.constant 1.000000e+00 : f32
    %14 = vector.broadcast %cst_6 : f32 to vector<2x32xf32>
    %15 = arith.addf %14, %13 : vector<2x32xf32>
    %16 = arith.divf %14, %15 : vector<2x32xf32>
    %17 = vector.extract_strided_slice %7 {offsets = [0, 32], sizes = [2, 32], strides = [1, 1]} : vector<2x96xf32> to vector<2x32xf32>
    %18 = vector.extract_strided_slice %8 {offsets = [0, 32], sizes = [2, 32], strides = [1, 1]} : vector<2x96xf32> to vector<2x32xf32>
    %19 = arith.addf %17, %18 : vector<2x32xf32>
    %20 = arith.negf %19 : vector<2x32xf32>
    %21 = math.exp %20 : vector<2x32xf32>
    %cst_7 = arith.constant 1.000000e+00 : f32
    %22 = vector.broadcast %cst_7 : f32 to vector<2x32xf32>
    %23 = arith.addf %22, %21 : vector<2x32xf32>
    %24 = arith.divf %22, %23 : vector<2x32xf32>
    %25 = vector.extract_strided_slice %7 {offsets = [0, 64], sizes = [2, 32], strides = [1, 1]} : vector<2x96xf32> to vector<2x32xf32>
    %26 = vector.extract_strided_slice %8 {offsets = [0, 64], sizes = [2, 32], strides = [1, 1]} : vector<2x96xf32> to vector<2x32xf32>
    %27 = arith.addf %26, %3 : vector<2x32xf32>
    %28 = arith.mulf %16, %27 : vector<2x32xf32>
    %29 = arith.addf %25, %28 : vector<2x32xf32>
    %30 = math.tanh %29 : vector<2x32xf32>
    %cst_8 = arith.constant 1.000000e+00 : f32
    %31 = vector.broadcast %cst_8 : f32 to vector<2x32xf32>
    %32 = arith.subf %31, %24 : vector<2x32xf32>
    %33 = arith.mulf %32, %30 : vector<2x32xf32>
    %34 = arith.mulf %24, %4 : vector<2x32xf32>
    %35 = arith.addf %33, %34 : vector<2x32xf32>
    %c1_i32 = arith.constant 1 : i32
    %36 = arith.index_cast %c1_i32 : i32 to index
    %c0_9 = arith.constant 0 : index
    %c0_10 = arith.constant 0 : index
    %37 = vector.load %arg0[%36, %c0_9, %c0_10] : memref<8x2x96xf32, #tpu.memory_space<vmem>>, vector<1x2x96xf32>
    %38 = vector.shape_cast %37 : vector<1x2x96xf32> to vector<2x96xf32>
    %cst_11 = arith.constant dense<0.000000e+00> : vector<2x96xf32>
    %39 = tpu.matmul %35, %0, %cst_11 {dimension_numbers = #tpu.dot_dimension_numbers<[1], [0], [0], [1], [0, 0, 1, 1], [], []>} : vector<2x32xf32>, vector<32x96xf32>, vector<2x96xf32> -> vector<2x96xf32>
    %40 = vector.extract_strided_slice %38 {offsets = [0, 0], sizes = [2, 32], strides = [1, 1]} : vector<2x96xf32> to vector<2x32xf32>
    %41 = vector.extract_strided_slice %39 {offsets = [0, 0], sizes = [2, 32], strides = [1, 1]} : vector<2x96xf32> to vector<2x32xf32>
    %42 = arith.addf %40, %41 : vector<2x32xf32>
    %43 = arith.negf %42 : vector<2x32xf32>
    %44 = math.exp %43 : vector<2x32xf32>
    %cst_12 = arith.constant 1.000000e+00 : f32
    %45 = vector.broadcast %cst_12 : f32 to vector<2x32xf32>
    %46 = arith.addf %45, %44 : vector<2x32xf32>
    %47 = arith.divf %45, %46 : vector<2x32xf32>
    %48 = vector.extract_strided_slice %38 {offsets = [0, 32], sizes = [2, 32], strides = [1, 1]} : vector<2x96xf32> to vector<2x32xf32>
    %49 = vector.extract_strided_slice %39 {offsets = [0, 32], sizes = [2, 32], strides = [1, 1]} : vector<2x96xf32> to vector<2x32xf32>
    %50 = arith.addf %48, %49 : vector<2x32xf32>
    %51 = arith.negf %50 : vector<2x32xf32>
    %52 = math.exp %51 : vector<2x32xf32>
    %cst_13 = arith.constant 1.000000e+00 : f32
    %53 = vector.broadcast %cst_13 : f32 to vector<2x32xf32>
    %54 = arith.addf %53, %52 : vector<2x32xf32>
    %55 = arith.divf %53, %54 : vector<2x32xf32>
    %56 = vector.extract_strided_slice %38 {offsets = [0, 64], sizes = [2, 32], strides = [1, 1]} : vector<2x96xf32> to vector<2x32xf32>
    %57 = vector.extract_strided_slice %39 {offsets = [0, 64], sizes = [2, 32], strides = [1, 1]} : vector<2x96xf32> to vector<2x32xf32>
    %58 = arith.addf %57, %3 : vector<2x32xf32>
    %59 = arith.mulf %47, %58 : vector<2x32xf32>
    %60 = arith.addf %56, %59 : vector<2x32xf32>
    %61 = math.tanh %60 : vector<2x32xf32>
    %cst_14 = arith.constant 1.000000e+00 : f32
    %62 = vector.broadcast %cst_14 : f32 to vector<2x32xf32>
    %63 = arith.subf %62, %55 : vector<2x32xf32>
    %64 = arith.mulf %63, %61 : vector<2x32xf32>
    %65 = arith.mulf %55, %35 : vector<2x32xf32>
    %66 = arith.addf %64, %65 : vector<2x32xf32>
    %c2_i32 = arith.constant 2 : i32
    %67 = arith.index_cast %c2_i32 : i32 to index
    %c0_15 = arith.constant 0 : index
    %c0_16 = arith.constant 0 : index
    %68 = vector.load %arg0[%67, %c0_15, %c0_16] : memref<8x2x96xf32, #tpu.memory_space<vmem>>, vector<1x2x96xf32>
    %69 = vector.shape_cast %68 : vector<1x2x96xf32> to vector<2x96xf32>
    %cst_17 = arith.constant dense<0.000000e+00> : vector<2x96xf32>
    %70 = tpu.matmul %66, %0, %cst_17 {dimension_numbers = #tpu.dot_dimension_numbers<[1], [0], [0], [1], [0, 0, 1, 1], [], []>} : vector<2x32xf32>, vector<32x96xf32>, vector<2x96xf32> -> vector<2x96xf32>
    %71 = vector.extract_strided_slice %69 {offsets = [0, 0], sizes = [2, 32], strides = [1, 1]} : vector<2x96xf32> to vector<2x32xf32>
    %72 = vector.extract_strided_slice %70 {offsets = [0, 0], sizes = [2, 32], strides = [1, 1]} : vector<2x96xf32> to vector<2x32xf32>
    %73 = arith.addf %71, %72 : vector<2x32xf32>
    %74 = arith.negf %73 : vector<2x32xf32>
    %75 = math.exp %74 : vector<2x32xf32>
    %cst_18 = arith.constant 1.000000e+00 : f32
    %76 = vector.broadcast %cst_18 : f32 to vector<2x32xf32>
    %77 = arith.addf %76, %75 : vector<2x32xf32>
    %78 = arith.divf %76, %77 : vector<2x32xf32>
    %79 = vector.extract_strided_slice %69 {offsets = [0, 32], sizes = [2, 32], strides = [1, 1]} : vector<2x96xf32> to vector<2x32xf32>
    %80 = vector.extract_strided_slice %70 {offsets = [0, 32], sizes = [2, 32], strides = [1, 1]} : vector<2x96xf32> to vector<2x32xf32>
    %81 = arith.addf %79, %80 : vector<2x32xf32>
    %82 = arith.negf %81 : vector<2x32xf32>
    %83 = math.exp %82 : vector<2x32xf32>
    %cst_19 = arith.constant 1.000000e+00 : f32
    %84 = vector.broadcast %cst_19 : f32 to vector<2x32xf32>
    %85 = arith.addf %84, %83 : vector<2x32xf32>
    %86 = arith.divf %84, %85 : vector<2x32xf32>
    %87 = vector.extract_strided_slice %69 {offsets = [0, 64], sizes = [2, 32], strides = [1, 1]} : vector<2x96xf32> to vector<2x32xf32>
    %88 = vector.extract_strided_slice %70 {offsets = [0, 64], sizes = [2, 32], strides = [1, 1]} : vector<2x96xf32> to vector<2x32xf32>
    %89 = arith.addf %88, %3 : vector<2x32xf32>
    %90 = arith.mulf %78, %89 : vector<2x32xf32>
    %91 = arith.addf %87, %90 : vector<2x32xf32>
    %92 = math.tanh %91 : vector<2x32xf32>
    %cst_20 = arith.constant 1.000000e+00 : f32
    %93 = vector.broadcast %cst_20 : f32 to vector<2x32xf32>
    %94 = arith.subf %93, %86 : vector<2x32xf32>
    %95 = arith.mulf %94, %92 : vector<2x32xf32>
    %96 = arith.mulf %86, %66 : vector<2x32xf32>
    %97 = arith.addf %95, %96 : vector<2x32xf32>
    %c3_i32 = arith.constant 3 : i32
    %98 = arith.index_cast %c3_i32 : i32 to index
    %c0_21 = arith.constant 0 : index
    %c0_22 = arith.constant 0 : index
    %99 = vector.load %arg0[%98, %c0_21, %c0_22] : memref<8x2x96xf32, #tpu.memory_space<vmem>>, vector<1x2x96xf32>
    %100 = vector.shape_cast %99 : vector<1x2x96xf32> to vector<2x96xf32>
    %cst_23 = arith.constant dense<0.000000e+00> : vector<2x96xf32>
    %101 = tpu.matmul %97, %0, %cst_23 {dimension_numbers = #tpu.dot_dimension_numbers<[1], [0], [0], [1], [0, 0, 1, 1], [], []>} : vector<2x32xf32>, vector<32x96xf32>, vector<2x96xf32> -> vector<2x96xf32>
    %102 = vector.extract_strided_slice %100 {offsets = [0, 0], sizes = [2, 32], strides = [1, 1]} : vector<2x96xf32> to vector<2x32xf32>
    %103 = vector.extract_strided_slice %101 {offsets = [0, 0], sizes = [2, 32], strides = [1, 1]} : vector<2x96xf32> to vector<2x32xf32>
    %104 = arith.addf %102, %103 : vector<2x32xf32>
    %105 = arith.negf %104 : vector<2x32xf32>
    %106 = math.exp %105 : vector<2x32xf32>
    %cst_24 = arith.constant 1.000000e+00 : f32
    %107 = vector.broadcast %cst_24 : f32 to vector<2x32xf32>
    %108 = arith.addf %107, %106 : vector<2x32xf32>
    %109 = arith.divf %107, %108 : vector<2x32xf32>
    %110 = vector.extract_strided_slice %100 {offsets = [0, 32], sizes = [2, 32], strides = [1, 1]} : vector<2x96xf32> to vector<2x32xf32>
    %111 = vector.extract_strided_slice %101 {offsets = [0, 32], sizes = [2, 32], strides = [1, 1]} : vector<2x96xf32> to vector<2x32xf32>
    %112 = arith.addf %110, %111 : vector<2x32xf32>
    %113 = arith.negf %112 : vector<2x32xf32>
    %114 = math.exp %113 : vector<2x32xf32>
    %cst_25 = arith.constant 1.000000e+00 : f32
    %115 = vector.broadcast %cst_25 : f32 to vector<2x32xf32>
    %116 = arith.addf %115, %114 : vector<2x32xf32>
    %117 = arith.divf %115, %116 : vector<2x32xf32>
    %118 = vector.extract_strided_slice %100 {offsets = [0, 64], sizes = [2, 32], strides = [1, 1]} : vector<2x96xf32> to vector<2x32xf32>
    %119 = vector.extract_strided_slice %101 {offsets = [0, 64], sizes = [2, 32], strides = [1, 1]} : vector<2x96xf32> to vector<2x32xf32>
    %120 = arith.addf %119, %3 : vector<2x32xf32>
    %121 = arith.mulf %109, %120 : vector<2x32xf32>
    %122 = arith.addf %118, %121 : vector<2x32xf32>
    %123 = math.tanh %122 : vector<2x32xf32>
    %cst_26 = arith.constant 1.000000e+00 : f32
    %124 = vector.broadcast %cst_26 : f32 to vector<2x32xf32>
    %125 = arith.subf %124, %117 : vector<2x32xf32>
    %126 = arith.mulf %125, %123 : vector<2x32xf32>
    %127 = arith.mulf %117, %97 : vector<2x32xf32>
    %128 = arith.addf %126, %127 : vector<2x32xf32>
    %c4_i32 = arith.constant 4 : i32
    %129 = arith.index_cast %c4_i32 : i32 to index
    %c0_27 = arith.constant 0 : index
    %c0_28 = arith.constant 0 : index
    %130 = vector.load %arg0[%129, %c0_27, %c0_28] : memref<8x2x96xf32, #tpu.memory_space<vmem>>, vector<1x2x96xf32>
    %131 = vector.shape_cast %130 : vector<1x2x96xf32> to vector<2x96xf32>
    %cst_29 = arith.constant dense<0.000000e+00> : vector<2x96xf32>
    %132 = tpu.matmul %128, %0, %cst_29 {dimension_numbers = #tpu.dot_dimension_numbers<[1], [0], [0], [1], [0, 0, 1, 1], [], []>} : vector<2x32xf32>, vector<32x96xf32>, vector<2x96xf32> -> vector<2x96xf32>
    %133 = vector.extract_strided_slice %131 {offsets = [0, 0], sizes = [2, 32], strides = [1, 1]} : vector<2x96xf32> to vector<2x32xf32>
    %134 = vector.extract_strided_slice %132 {offsets = [0, 0], sizes = [2, 32], strides = [1, 1]} : vector<2x96xf32> to vector<2x32xf32>
    %135 = arith.addf %133, %134 : vector<2x32xf32>
    %136 = arith.negf %135 : vector<2x32xf32>
    %137 = math.exp %136 : vector<2x32xf32>
    %cst_30 = arith.constant 1.000000e+00 : f32
    %138 = vector.broadcast %cst_30 : f32 to vector<2x32xf32>
    %139 = arith.addf %138, %137 : vector<2x32xf32>
    %140 = arith.divf %138, %139 : vector<2x32xf32>
    %141 = vector.extract_strided_slice %131 {offsets = [0, 32], sizes = [2, 32], strides = [1, 1]} : vector<2x96xf32> to vector<2x32xf32>
    %142 = vector.extract_strided_slice %132 {offsets = [0, 32], sizes = [2, 32], strides = [1, 1]} : vector<2x96xf32> to vector<2x32xf32>
    %143 = arith.addf %141, %142 : vector<2x32xf32>
    %144 = arith.negf %143 : vector<2x32xf32>
    %145 = math.exp %144 : vector<2x32xf32>
    %cst_31 = arith.constant 1.000000e+00 : f32
    %146 = vector.broadcast %cst_31 : f32 to vector<2x32xf32>
    %147 = arith.addf %146, %145 : vector<2x32xf32>
    %148 = arith.divf %146, %147 : vector<2x32xf32>
    %149 = vector.extract_strided_slice %131 {offsets = [0, 64], sizes = [2, 32], strides = [1, 1]} : vector<2x96xf32> to vector<2x32xf32>
    %150 = vector.extract_strided_slice %132 {offsets = [0, 64], sizes = [2, 32], strides = [1, 1]} : vector<2x96xf32> to vector<2x32xf32>
    %151 = arith.addf %150, %3 : vector<2x32xf32>
    %152 = arith.mulf %140, %151 : vector<2x32xf32>
    %153 = arith.addf %149, %152 : vector<2x32xf32>
    %154 = math.tanh %153 : vector<2x32xf32>
    %cst_32 = arith.constant 1.000000e+00 : f32
    %155 = vector.broadcast %cst_32 : f32 to vector<2x32xf32>
    %156 = arith.subf %155, %148 : vector<2x32xf32>
    %157 = arith.mulf %156, %154 : vector<2x32xf32>
    %158 = arith.mulf %148, %128 : vector<2x32xf32>
    %159 = arith.addf %157, %158 : vector<2x32xf32>
    %c5_i32 = arith.constant 5 : i32
    %160 = arith.index_cast %c5_i32 : i32 to index
    %c0_33 = arith.constant 0 : index
    %c0_34 = arith.constant 0 : index
    %161 = vector.load %arg0[%160, %c0_33, %c0_34] : memref<8x2x96xf32, #tpu.memory_space<vmem>>, vector<1x2x96xf32>
    %162 = vector.shape_cast %161 : vector<1x2x96xf32> to vector<2x96xf32>
    %cst_35 = arith.constant dense<0.000000e+00> : vector<2x96xf32>
    %163 = tpu.matmul %159, %0, %cst_35 {dimension_numbers = #tpu.dot_dimension_numbers<[1], [0], [0], [1], [0, 0, 1, 1], [], []>} : vector<2x32xf32>, vector<32x96xf32>, vector<2x96xf32> -> vector<2x96xf32>
    %164 = vector.extract_strided_slice %162 {offsets = [0, 0], sizes = [2, 32], strides = [1, 1]} : vector<2x96xf32> to vector<2x32xf32>
    %165 = vector.extract_strided_slice %163 {offsets = [0, 0], sizes = [2, 32], strides = [1, 1]} : vector<2x96xf32> to vector<2x32xf32>
    %166 = arith.addf %164, %165 : vector<2x32xf32>
    %167 = arith.negf %166 : vector<2x32xf32>
    %168 = math.exp %167 : vector<2x32xf32>
    %cst_36 = arith.constant 1.000000e+00 : f32
    %169 = vector.broadcast %cst_36 : f32 to vector<2x32xf32>
    %170 = arith.addf %169, %168 : vector<2x32xf32>
    %171 = arith.divf %169, %170 : vector<2x32xf32>
    %172 = vector.extract_strided_slice %162 {offsets = [0, 32], sizes = [2, 32], strides = [1, 1]} : vector<2x96xf32> to vector<2x32xf32>
    %173 = vector.extract_strided_slice %163 {offsets = [0, 32], sizes = [2, 32], strides = [1, 1]} : vector<2x96xf32> to vector<2x32xf32>
    %174 = arith.addf %172, %173 : vector<2x32xf32>
    %175 = arith.negf %174 : vector<2x32xf32>
    %176 = math.exp %175 : vector<2x32xf32>
    %cst_37 = arith.constant 1.000000e+00 : f32
    %177 = vector.broadcast %cst_37 : f32 to vector<2x32xf32>
    %178 = arith.addf %177, %176 : vector<2x32xf32>
    %179 = arith.divf %177, %178 : vector<2x32xf32>
    %180 = vector.extract_strided_slice %162 {offsets = [0, 64], sizes = [2, 32], strides = [1, 1]} : vector<2x96xf32> to vector<2x32xf32>
    %181 = vector.extract_strided_slice %163 {offsets = [0, 64], sizes = [2, 32], strides = [1, 1]} : vector<2x96xf32> to vector<2x32xf32>
    %182 = arith.addf %181, %3 : vector<2x32xf32>
    %183 = arith.mulf %171, %182 : vector<2x32xf32>
    %184 = arith.addf %180, %183 : vector<2x32xf32>
    %185 = math.tanh %184 : vector<2x32xf32>
    %cst_38 = arith.constant 1.000000e+00 : f32
    %186 = vector.broadcast %cst_38 : f32 to vector<2x32xf32>
    %187 = arith.subf %186, %179 : vector<2x32xf32>
    %188 = arith.mulf %187, %185 : vector<2x32xf32>
    %189 = arith.mulf %179, %159 : vector<2x32xf32>
    %190 = arith.addf %188, %189 : vector<2x32xf32>
    %c6_i32 = arith.constant 6 : i32
    %191 = arith.index_cast %c6_i32 : i32 to index
    %c0_39 = arith.constant 0 : index
    %c0_40 = arith.constant 0 : index
    %192 = vector.load %arg0[%191, %c0_39, %c0_40] : memref<8x2x96xf32, #tpu.memory_space<vmem>>, vector<1x2x96xf32>
    %193 = vector.shape_cast %192 : vector<1x2x96xf32> to vector<2x96xf32>
    %cst_41 = arith.constant dense<0.000000e+00> : vector<2x96xf32>
    %194 = tpu.matmul %190, %0, %cst_41 {dimension_numbers = #tpu.dot_dimension_numbers<[1], [0], [0], [1], [0, 0, 1, 1], [], []>} : vector<2x32xf32>, vector<32x96xf32>, vector<2x96xf32> -> vector<2x96xf32>
    %195 = vector.extract_strided_slice %193 {offsets = [0, 0], sizes = [2, 32], strides = [1, 1]} : vector<2x96xf32> to vector<2x32xf32>
    %196 = vector.extract_strided_slice %194 {offsets = [0, 0], sizes = [2, 32], strides = [1, 1]} : vector<2x96xf32> to vector<2x32xf32>
    %197 = arith.addf %195, %196 : vector<2x32xf32>
    %198 = arith.negf %197 : vector<2x32xf32>
    %199 = math.exp %198 : vector<2x32xf32>
    %cst_42 = arith.constant 1.000000e+00 : f32
    %200 = vector.broadcast %cst_42 : f32 to vector<2x32xf32>
    %201 = arith.addf %200, %199 : vector<2x32xf32>
    %202 = arith.divf %200, %201 : vector<2x32xf32>
    %203 = vector.extract_strided_slice %193 {offsets = [0, 32], sizes = [2, 32], strides = [1, 1]} : vector<2x96xf32> to vector<2x32xf32>
    %204 = vector.extract_strided_slice %194 {offsets = [0, 32], sizes = [2, 32], strides = [1, 1]} : vector<2x96xf32> to vector<2x32xf32>
    %205 = arith.addf %203, %204 : vector<2x32xf32>
    %206 = arith.negf %205 : vector<2x32xf32>
    %207 = math.exp %206 : vector<2x32xf32>
    %cst_43 = arith.constant 1.000000e+00 : f32
    %208 = vector.broadcast %cst_43 : f32 to vector<2x32xf32>
    %209 = arith.addf %208, %207 : vector<2x32xf32>
    %210 = arith.divf %208, %209 : vector<2x32xf32>
    %211 = vector.extract_strided_slice %193 {offsets = [0, 64], sizes = [2, 32], strides = [1, 1]} : vector<2x96xf32> to vector<2x32xf32>
    %212 = vector.extract_strided_slice %194 {offsets = [0, 64], sizes = [2, 32], strides = [1, 1]} : vector<2x96xf32> to vector<2x32xf32>
    %213 = arith.addf %212, %3 : vector<2x32xf32>
    %214 = arith.mulf %202, %213 : vector<2x32xf32>
    %215 = arith.addf %211, %214 : vector<2x32xf32>
    %216 = math.tanh %215 : vector<2x32xf32>
    %cst_44 = arith.constant 1.000000e+00 : f32
    %217 = vector.broadcast %cst_44 : f32 to vector<2x32xf32>
    %218 = arith.subf %217, %210 : vector<2x32xf32>
    %219 = arith.mulf %218, %216 : vector<2x32xf32>
    %220 = arith.mulf %210, %190 : vector<2x32xf32>
    %221 = arith.addf %219, %220 : vector<2x32xf32>
    %c7_i32 = arith.constant 7 : i32
    %222 = arith.index_cast %c7_i32 : i32 to index
    %c0_45 = arith.constant 0 : index
    %c0_46 = arith.constant 0 : index
    %223 = vector.load %arg0[%222, %c0_45, %c0_46] : memref<8x2x96xf32, #tpu.memory_space<vmem>>, vector<1x2x96xf32>
    %224 = vector.shape_cast %223 : vector<1x2x96xf32> to vector<2x96xf32>
    %cst_47 = arith.constant dense<0.000000e+00> : vector<2x96xf32>
    %225 = tpu.matmul %221, %0, %cst_47 {dimension_numbers = #tpu.dot_dimension_numbers<[1], [0], [0], [1], [0, 0, 1, 1], [], []>} : vector<2x32xf32>, vector<32x96xf32>, vector<2x96xf32> -> vector<2x96xf32>
    %226 = vector.extract_strided_slice %224 {offsets = [0, 0], sizes = [2, 32], strides = [1, 1]} : vector<2x96xf32> to vector<2x32xf32>
    %227 = vector.extract_strided_slice %225 {offsets = [0, 0], sizes = [2, 32], strides = [1, 1]} : vector<2x96xf32> to vector<2x32xf32>
    %228 = arith.addf %226, %227 : vector<2x32xf32>
    %229 = arith.negf %228 : vector<2x32xf32>
    %230 = math.exp %229 : vector<2x32xf32>
    %cst_48 = arith.constant 1.000000e+00 : f32
    %231 = vector.broadcast %cst_48 : f32 to vector<2x32xf32>
    %232 = arith.addf %231, %230 : vector<2x32xf32>
    %233 = arith.divf %231, %232 : vector<2x32xf32>
    %234 = vector.extract_strided_slice %224 {offsets = [0, 32], sizes = [2, 32], strides = [1, 1]} : vector<2x96xf32> to vector<2x32xf32>
    %235 = vector.extract_strided_slice %225 {offsets = [0, 32], sizes = [2, 32], strides = [1, 1]} : vector<2x96xf32> to vector<2x32xf32>
    %236 = arith.addf %234, %235 : vector<2x32xf32>
    %237 = arith.negf %236 : vector<2x32xf32>
    %238 = math.exp %237 : vector<2x32xf32>
    %cst_49 = arith.constant 1.000000e+00 : f32
    %239 = vector.broadcast %cst_49 : f32 to vector<2x32xf32>
    %240 = arith.addf %239, %238 : vector<2x32xf32>
    %241 = arith.divf %239, %240 : vector<2x32xf32>
    %242 = vector.extract_strided_slice %224 {offsets = [0, 64], sizes = [2, 32], strides = [1, 1]} : vector<2x96xf32> to vector<2x32xf32>
    %243 = vector.extract_strided_slice %225 {offsets = [0, 64], sizes = [2, 32], strides = [1, 1]} : vector<2x96xf32> to vector<2x32xf32>
    %244 = arith.addf %243, %3 : vector<2x32xf32>
    %245 = arith.mulf %233, %244 : vector<2x32xf32>
    %246 = arith.addf %242, %245 : vector<2x32xf32>
    %247 = math.tanh %246 : vector<2x32xf32>
    %cst_50 = arith.constant 1.000000e+00 : f32
    %248 = vector.broadcast %cst_50 : f32 to vector<2x32xf32>
    %249 = arith.subf %248, %241 : vector<2x32xf32>
    %250 = arith.mulf %249, %247 : vector<2x32xf32>
    %251 = arith.mulf %241, %221 : vector<2x32xf32>
    %252 = arith.addf %250, %251 : vector<2x32xf32>
    %c8_i32 = arith.constant 8 : i32
    %c0_51 = arith.constant 0 : index
    %c0_52 = arith.constant 0 : index
    %253 = vector.load %arg3[%c0_51, %c0_52] : memref<2x32xf32, #tpu.memory_space<vmem>>, vector<2x32xf32>
    tpu.vector_store %arg3[%c0_51, %c0_52], %252 {strides = array<i32>} : memref<2x32xf32, #tpu.memory_space<vmem>>, vector<2x32xf32>,
    return
  }
}

</mosaic_0001>

<bundles_post_ra>
// kernel: tpu_custom_call.1
= control target key start
LH: loop header
LB: loop body
LE: loop exit
PB: predicated region body
PF: predicated region fallthrough
CT: control target
= control target key end

     0   :  { %8 = vsyncpa [#allocation3], 0  ;;  %s1406_s0 = inlined_call_operand.hbm [shape: f32[8,2,96], index: 0, kind: input, shape index: {}]   ;;  %s1407_s1 = inlined_call_operand.hbm [shape: f32[32,96], index: 1, kind: input, shape index: {}]   ;;  %s1408_s2 = inlined_call_operand.vmem [shape: f32[1,32], index: 2, kind: input, shape index: {}]   ;;  %s1409_s3 = inlined_call_operand.hbm [shape: f32[2,32], index: 3, kind: output, shape index: {}]  }
   0x1   :  { %9 = vsyncpa [#allocation6], 0 }
   0x2   :  { %10 = vsyncpa [#allocation4], 0  ;;  %s1232_s12 = smov [#allocation2]   ;;  %s1160_s16 = scalar_lea.hbm %s1406_s0, 256 }
   0x3   :  { %s16_s13 = sshll.u32 %s1232_s12, 4  ;;  %p1161_p0 = scmp.ne.s32.totalorder %s1406_s0, %s1160_s16  ;;  %s17_s13 = int_to_ptr.vmem [resolvable:$true] %s16_s13 }
   0x4   :  { %p1164_p1 = scmp.lt.u32.totalorder %s1160_s16, %s1406_s0 }
   0x6   :  { %p1166_p2 = pnand %p1164_p1, %p1161_p0 }
   0x8   :  { %1169 = shalt.err (!%p1166_p2)
}
   0x9   :  { %s1170_s21 = scalar_lea.vmem %s17_s13, 256  ;;  %p1175_p4 = scmp.lt.s32.totalorder %s17_s13, %s17_s13 }
   0xa   :  { %p1171_p3 = scmp.ne.s32.totalorder %s17_s13, %s1170_s21  ;;  %p1176_p5 = scmp.lt.s32.totalorder %s1170_s21, %s1170_s21 }
   0xc   :  { %p1177_p6 = por %p1176_p5, %p1175_p4 }
   0xe   :  { %p1178_p7 = pnand %p1177_p6, %p1171_p3 }
  0x10   :  { %1181 = shalt.err (!%p1178_p7)
}
  0x11   :  { %s1233_s22 = smov 32   ;;  %s1234_s23 = smov 2  }
  0x12   :  { %22 = dma.hbm_to_vmem [thread:$0]  %s1406_s0, 256, %s17_s13, [#allocation3], %s1233_s22, %s1233_s22, %s1234_s23  }
  0x13   :  { %s1235_s26 = smov [#allocation5]   ;;  %s1182_s30 = scalar_lea.hbm %s1407_s1, 512 }
  0x14   :  { %s28_s27 = sshll.u32 %s1235_s26, 4  ;;  %p1183_p8 = scmp.ne.s32.totalorder %s1407_s1, %s1182_s30  ;;  %s29_s27 = int_to_ptr.vmem [resolvable:$true] %s28_s27 }
  0x15   :  { %p1186_p9 = scmp.lt.u32.totalorder %s1182_s30, %s1407_s1 }
  0x17   :  { %p1188_p10 = pnand %p1186_p9, %p1183_p8 }
  0x19   :  { %1191 = shalt.err (!%p1188_p10)
}
  0x1a   :  { %s1192_s8 = scalar_lea.vmem %s29_s27, 512  ;;  %p1197_p12 = scmp.lt.s32.totalorder %s29_s27, %s29_s27 }
  0x1b   :  { %p1193_p11 = scmp.ne.s32.totalorder %s29_s27, %s1192_s8  ;;  %p1198_p13 = scmp.lt.s32.totalorder %s1192_s8, %s1192_s8 }
  0x1d   :  { %p1199_p0 = por %p1198_p13, %p1197_p12 }
  0x1f   :  { %p1200_p1 = pnand %p1199_p0, %p1193_p11 }
  0x21   :  { %1203 = shalt.err (!%p1200_p1)
}
  0x22   :  { %s1236_s0 = smov 128   ;;  %s1237_s9 = smov 8  }
  0x23   :  { %34 = dma.hbm_to_vmem [thread:$0]  %s1407_s1, 512, %s29_s27, [#allocation6], %s1236_s0, %s1236_s0, %s1237_s9  }
  0x24   :  { %1226 = dma.done.wait [#allocation3], 256  }
  0x25   :  { %1227 = vsyncadd [#allocation3], 4294967040 }
  0x26   :  { %1228 = dma.done.wait [#allocation6], 512  }
  0x27   :  { %1229 = vsyncadd [#allocation6], 4294966784  ;;  %v1238_v0 = vmov 0.0|0.0   ;;  %vm1239_vm0 = vmmov 0   ;;  %v1240_v1 = vmov 0.0   ;;  %v43_v2 = vld [vmem:[#allocation5] sm:$0xff] }
  0x28   :  { %1052 = vmatprep.subr.bf16.mxu0 %v1238_v0  ;;  %972 = vmatprep.mubr.msk.f32.mxu0 %vm1239_vm0, %v1240_v1  ;;  %v44_v3 = vld [vmem:[#allocation5 + $0x8] sm:$0xff]  ;;  %v45_v4 = vld [vmem:[#allocation5 + $0x10] sm:$0xff]  ;;  %v46_v6 = vld [vmem:[#allocation5 + $0x18] sm:$0xff]  ;;  %s1241_s13 = smov 64   ;;  %vm54_vm1 = vcmask 261120   ;;  %s1243_s14 = smov [#allocation7]  }
  0x29   :  { %1058 = vmatprep.subr.bf16.mxu1 %v1238_v0  ;;  %983 = vmatprep.mubr.msk.f32.mxu1 %vm1239_vm0, %v1240_v1  ;;  %v1294_v5 = vpack.c.bf16 %v44_v3, %v43_v2  ;;  %v908_v7 = vld [vmem:[%s1408_s2] ss:$0 sm:$0xff]  ;;  %v1301_v8 = vpack.c.bf16 %v46_v6, %v45_v4  ;;  %s1242_s2 = smov 96   ;;  %v159_v33 = vld [vmem:[#allocation2 + $0x2] sm:$0x3]  ;;  %s898_s15 = sshll.u32 %s1243_s14, 4  ;;  %s899_s15 = int_to_ptr.vmem [resolvable:$true] %s898_s15 }
  0x2a   :  { %135 = vrot.lane.b32.xlu0 %v908_v7, %s1241_s13  ;;  %v53_v13 = vld [vmem:[#allocation2] sm:$0x3]  ;;  %v263_v53 = vld [vmem:[#allocation2 + $0x4] sm:$0x3]  ;;  %vm890_vm2 = vcmask 254976   ;;  %s1204_s16 = scalar_lea.vmem %s899_s15, 32  ;;  %p1209_p3 = scmp.lt.s32.totalorder %s899_s15, %s899_s15 }
  0x2b   :  { %1054 = vmatpush3.bf16.msra.mxu0 %v1294_v5  ;;  %1060 = vmatpush3.bf16.msra.mxu1 %v1294_v5  ;;  %p1205_p2 = scmp.ne.s32.totalorder %s899_s15, %s1204_s16  ;;  %p1210_p4 = scmp.lt.s32.totalorder %s1204_s16, %s1204_s16 }
  0x2c   :  { %1055 = vmatprep.subr.bf16.mxu0 %v1238_v0  ;;  %1061 = vmatprep.subr.bf16.mxu1 %v1238_v0 }
  0x2d   :  { %p1211_p5 = por %p1210_p4, %p1209_p3 }
  0x2f   :  { %1057 = vmatpush3.bf16.msra.mxu0 %v1301_v8  ;;  %1063 = vmatpush3.bf16.msra.mxu1 %v1301_v8  ;;  %p1212_p6 = pnand %p1211_p5, %p1205_p2 }
  0x30   :  { %1064 = vmatprep.subr.bf16.mxu0 %v1238_v0  ;;  %1070 = vmatprep.subr.bf16.mxu1 %v1238_v0 }
  0x32   :  { %973 = vmatmul.mubr.f32.vlgmr.msra.gmra.mrb[0].mxu0 %v1240_v1 }
  0x33   :  { %1066 = vmatpush3.bf16.msra.mxu0 %v1294_v5  ;;  %994 = vmatprep.mubr.msk.f32.mxu0 %vm1239_vm0, %v1240_v1 }
  0x34   :  { %1067 = vmatprep.subr.bf16.mxu0 %v1238_v0 }
  0x37   :  { %1069 = vmatpush3.bf16.msra.mxu0 %v1301_v8 }
  0x38   :  { %1076 = vmatprep.subr.bf16.mxu0 %v1238_v0 }
  0x9c   :  { %v1317_v9 = vpop.permute.xlu0 %135 }
 0x105   :  { %v124_v10 = vpop.f32.mrb[0].mxu0 }
 0x106   :  { %v138_v11 = vadd.f32 %v1317_v9, %v124_v10  ;;  %v974_v12 = vpop.f32.mrb[1].mxu0  ;;  %v128_v14 = vadd.f32 %v124_v10, %v53_v13 }
 0x108   :  { %140 = vrot.lane.b32.xlu0 %v138_v11, %s1241_s13  ;;  %v909_v15 = vmul.f32 -1.442695, %v128_v14  ;;  %v367_v14 = vld [vmem:[#allocation2 + $0x6] sm:$0x3] }
 0x10a   :  { %1112 = vpow2.f32 %v909_v15 }
 0x114   :  { %v1113_v16 = vpop.eup %1112 }
 0x115   :  { %v132_v17 = vadd.f32 1.0, %v1113_v16 }
 0x117   :  { %1114 = vrcp.f32 %v132_v17 }
 0x121   :  { %v1115_v18 = vpop.eup %1114 }
 0x122   :  { %v150_v24 = vsub.f32 1.0, %v1115_v18  ;;  %v156_v26 = vmul.f32 0.0, %v1115_v18 }
 0x17a   :  { %v141_v19 = vpop.permute.xlu0 %140 }
 0x17b   :  { %v143_v20 = vmul.f32 %v1115_v18, %v141_v19 }
 0x17d   :  { %145 = vrot.lane.b32.xlu1 %v143_v20, %s1241_s13 }
 0x1ef   :  { %v146_v21 = vpop.permute.xlu1 %145 }
 0x1f0   :  { %v148_v22 = vadd.f32 %v146_v21, %v53_v13 }
 0x1f2   :  { %1116 = vtanh.f32 %v148_v22 }
 0x1fc   :  { %v1117_v23 = vpop.eup %1116 }
 0x1fd   :  { %152 = vrot.lane.b32.xlu1 %v1117_v23, %s1242_s2 }
 0x26f   :  { %v153_v25 = vpop.permute.xlu1 %152 }
 0x270   :  { %v155_v27 = vmul.f32 %v153_v25, %v150_v24 }
 0x272   :  { %v157_v28 = vadd.f32 %v156_v26, %v155_v27 }
 0x274   :  { %161 = vrot.lane.b32.xlu0 %v157_v28, %s1242_s2 }
 0x2e6   :  { %v162_v29 = vpop.permute.xlu0 %161 }
 0x2e7   :  { %984 = vmatmul.mubr.msk.f32.vlgmr.msra.gmra.mrb[0].mxu1 %vm54_vm1, %v162_v29 }
 0x2e8   :  { %1072 = vmatpush3.bf16.msra.mxu1 %v1294_v5  ;;  %1005 = vmatprep.mubr.msk.f32.mxu1 %vm1239_vm0, %v1240_v1 }
 0x2e9   :  { %1073 = vmatprep.subr.bf16.mxu1 %v1238_v0 }
 0x2ec   :  { %1075 = vmatpush3.bf16.msra.mxu1 %v1301_v8 }
 0x2ed   :  { %1082 = vmatprep.subr.bf16.mxu1 %v1238_v0 }
 0x3ba   :  { %v231_v30 = vpop.f32.mrb[0].mxu1 }
 0x3bb   :  { %v242_v31 = vadd.f32 %v231_v30, %v1317_v9  ;;  %v985_v32 = vpop.f32.mrb[1].mxu1  ;;  %v235_v34 = vadd.f32 %v231_v30, %v159_v33 }
 0x3bd   :  { %244 = vrot.lane.b32.xlu1 %v242_v31, %s1241_s13  ;;  %v911_v35 = vmul.f32 -1.442695, %v235_v34  ;;  %v471_v34 = vld [vmem:[#allocation2 + $0x8] sm:$0x3] }
 0x3bf   :  { %1118 = vpow2.f32 %v911_v35 }
 0x3c9   :  { %v1119_v36 = vpop.eup %1118 }
 0x3ca   :  { %v239_v37 = vadd.f32 1.0, %v1119_v36 }
 0x3cc   :  { %1120 = vrcp.f32 %v239_v37 }
 0x3d6   :  { %v1121_v38 = vpop.eup %1120 }
 0x3d7   :  { %v254_v44 = vsub.f32 1.0, %v1121_v38  ;;  %v260_v46 = vmul.f32 %v1121_v38, %v157_v28 }
 0x42f   :  { %v245_v39 = vpop.permute.xlu1 %244 }
 0x430   :  { %v247_v40 = vmul.f32 %v1121_v38, %v245_v39 }
 0x432   :  { %249 = vrot.lane.b32.xlu0 %v247_v40, %s1241_s13 }
 0x4a4   :  { %v250_v41 = vpop.permute.xlu0 %249 }
 0x4a5   :  { %v252_v42 = vadd.f32 %v250_v41, %v159_v33 }
 0x4a7   :  { %1122 = vtanh.f32 %v252_v42 }
 0x4b1   :  { %v1123_v43 = vpop.eup %1122 }
 0x4b2   :  { %256 = vrot.lane.b32.xlu1 %v1123_v43, %s1242_s2 }
 0x524   :  { %v257_v45 = vpop.permute.xlu1 %256 }
 0x525   :  { %v259_v47 = vmul.f32 %v257_v45, %v254_v44 }
 0x527   :  { %v261_v48 = vadd.f32 %v260_v46, %v259_v47 }
 0x529   :  { %265 = vrot.lane.b32.xlu0 %v261_v48, %s1242_s2 }
 0x59b   :  { %v266_v49 = vpop.permute.xlu0 %265 }
 0x59c   :  { %995 = vmatmul.mubr.msk.f32.vlgmr.msra.gmra.mrb[2].mxu0 %vm54_vm1, %v266_v49 }
 0x59d   :  { %1078 = vmatpush3.bf16.msra.mxu0 %v1294_v5  ;;  %1016 = vmatprep.mubr.msk.f32.mxu0 %vm1239_vm0, %v1240_v1 }
 0x59e   :  { %1079 = vmatprep.subr.bf16.mxu0 %v1238_v0 }
 0x5a1   :  { %1081 = vmatpush3.bf16.msra.mxu0 %v1301_v8 }
 0x5a2   :  { %1088 = vmatprep.subr.bf16.mxu0 %v1238_v0 }
 0x66f   :  { %v335_v50 = vpop.f32.mrb[2].mxu0 }
 0x670   :  { %v346_v51 = vadd.f32 %v335_v50, %v1317_v9  ;;  %v996_v52 = vpop.f32.mrb[3].mxu0  ;;  %v339_v54 = vadd.f32 %v335_v50, %v263_v53 }
 0x672   :  { %348 = vrot.lane.b32.xlu1 %v346_v51, %s1241_s13  ;;  %v913_v55 = vmul.f32 -1.442695, %v339_v54  ;;  %v575_v54 = vld [vmem:[#allocation2 + $0xa] sm:$0x3] }
 0x674   :  { %1124 = vpow2.f32 %v913_v55 }
 0x67e   :  { %v1125_v56 = vpop.eup %1124 }
 0x67f   :  { %v343_v57 = vadd.f32 1.0, %v1125_v56 }
 0x681   :  { %1126 = vrcp.f32 %v343_v57 }
 0x68b   :  { %v1127_v58 = vpop.eup %1126 }
 0x68c   :  { %v358_v2 = vsub.f32 1.0, %v1127_v58  ;;  %v364_v4 = vmul.f32 %v1127_v58, %v261_v48 }
 0x6e4   :  { %v349_v59 = vpop.permute.xlu1 %348 }
 0x6e5   :  { %v351_v60 = vmul.f32 %v1127_v58, %v349_v59 }
 0x6e7   :  { %353 = vrot.lane.b32.xlu0 %v351_v60, %s1241_s13 }
 0x759   :  { %v354_v61 = vpop.permute.xlu0 %353 }
 0x75a   :  { %v356_v62 = vadd.f32 %v354_v61, %v263_v53 }
 0x75c   :  { %1128 = vtanh.f32 %v356_v62 }
 0x766   :  { %v1129_v63 = vpop.eup %1128 }
 0x767   :  { %360 = vrot.lane.b32.xlu1 %v1129_v63, %s1242_s2 }
 0x7d9   :  { %v361_v3 = vpop.permute.xlu1 %360 }
 0x7da   :  { %v363_v6 = vmul.f32 %v361_v3, %v358_v2 }
 0x7dc   :  { %v365_v7 = vadd.f32 %v364_v4, %v363_v6 }
 0x7de   :  { %369 = vrot.lane.b32.xlu0 %v365_v7, %s1242_s2 }
 0x850   :  { %v370_v10 = vpop.permute.xlu0 %369 }
 0x851   :  { %1006 = vmatmul.mubr.msk.f32.vlgmr.msra.gmra.mrb[2].mxu1 %vm54_vm1, %v370_v10 }
 0x852   :  { %1084 = vmatpush3.bf16.msra.mxu1 %v1294_v5  ;;  %1027 = vmatprep.mubr.msk.f32.mxu1 %vm1239_vm0, %v1240_v1 }
 0x853   :  { %1085 = vmatprep.subr.bf16.mxu1 %v1238_v0 }
 0x856   :  { %1087 = vmatpush3.bf16.msra.mxu1 %v1301_v8 }
 0x857   :  { %1094 = vmatprep.subr.bf16.mxu1 %v1238_v0 }
 0x924   :  { %v439_v11 = vpop.f32.mrb[2].mxu1 }
 0x925   :  { %v450_v12 = vadd.f32 %v439_v11, %v1317_v9  ;;  %v1007_v13 = vpop.f32.mrb[3].mxu1  ;;  %v443_v15 = vadd.f32 %v439_v11, %v367_v14  ;;  %v679_v11 = vld [vmem:[#allocation2 + $0xc] sm:$0x3] }
 0x927   :  { %452 = vrot.lane.b32.xlu1 %v450_v12, %s1241_s13  ;;  %v915_v16 = vmul.f32 -1.442695, %v443_v15 }
 0x929   :  { %1130 = vpow2.f32 %v915_v16 }
 0x933   :  { %v1131_v17 = vpop.eup %1130 }
 0x934   :  { %v447_v18 = vadd.f32 1.0, %v1131_v17 }
 0x936   :  { %1132 = vrcp.f32 %v447_v18 }
 0x940   :  { %v1133_v19 = vpop.eup %1132 }
 0x941   :  { %v462_v25 = vsub.f32 1.0, %v1133_v19  ;;  %v468_v27 = vmul.f32 %v1133_v19, %v365_v7 }
 0x999   :  { %v453_v20 = vpop.permute.xlu1 %452 }
 0x99a   :  { %v455_v21 = vmul.f32 %v1133_v19, %v453_v20 }
 0x99c   :  { %457 = vrot.lane.b32.xlu0 %v455_v21, %s1241_s13 }
 0xa0e   :  { %v458_v22 = vpop.permute.xlu0 %457 }
 0xa0f   :  { %v460_v23 = vadd.f32 %v458_v22, %v367_v14 }
 0xa11   :  { %1134 = vtanh.f32 %v460_v23 }
 0xa1b   :  { %v1135_v24 = vpop.eup %1134 }
 0xa1c   :  { %464 = vrot.lane.b32.xlu1 %v1135_v24, %s1242_s2 }
 0xa8e   :  { %v465_v26 = vpop.permute.xlu1 %464 }
 0xa8f   :  { %v467_v28 = vmul.f32 %v465_v26, %v462_v25 }
 0xa91   :  { %v469_v29 = vadd.f32 %v468_v27, %v467_v28 }
 0xa93   :  { %473 = vrot.lane.b32.xlu0 %v469_v29, %s1242_s2 }
 0xb05   :  { %v474_v30 = vpop.permute.xlu0 %473 }
 0xb06   :  { %1017 = vmatmul.mubr.msk.f32.vlgmr.msra.gmra.mrb[4].mxu0 %vm54_vm1, %v474_v30 }
 0xb07   :  { %1090 = vmatpush3.bf16.msra.mxu0 %v1294_v5  ;;  %1038 = vmatprep.mubr.msk.f32.mxu0 %vm1239_vm0, %v1240_v1 }
 0xb08   :  { %1091 = vmatprep.subr.bf16.mxu0 %v1238_v0 }
 0xb0b   :  { %1093 = vmatpush3.bf16.msra.mxu0 %v1301_v8 }
 0xbd9   :  { %v543_v31 = vpop.f32.mrb[4].mxu0 }
 0xbda   :  { %v554_v32 = vadd.f32 %v543_v31, %v1317_v9  ;;  %v1018_v33 = vpop.f32.mrb[5].mxu0  ;;  %v547_v35 = vadd.f32 %v543_v31, %v471_v34  ;;  %v783_v31 = vld [vmem:[#allocation2 + $0xe] sm:$0x3] }
 0xbdc   :  { %556 = vrot.lane.b32.xlu1 %v554_v32, %s1241_s13  ;;  %v917_v36 = vmul.f32 -1.442695, %v547_v35 }
 0xbde   :  { %1136 = vpow2.f32 %v917_v36 }
 0xbe8   :  { %v1137_v37 = vpop.eup %1136 }
 0xbe9   :  { %v551_v38 = vadd.f32 1.0, %v1137_v37 }
 0xbeb   :  { %1138 = vrcp.f32 %v551_v38 }
 0xbf5   :  { %v1139_v39 = vpop.eup %1138 }
 0xbf6   :  { %v566_v45 = vsub.f32 1.0, %v1139_v39  ;;  %v572_v47 = vmul.f32 %v1139_v39, %v469_v29 }
 0xc4e   :  { %v557_v40 = vpop.permute.xlu1 %556 }
 0xc4f   :  { %v559_v41 = vmul.f32 %v1139_v39, %v557_v40 }
 0xc51   :  { %561 = vrot.lane.b32.xlu0 %v559_v41, %s1241_s13 }
 0xcc3   :  { %v562_v42 = vpop.permute.xlu0 %561 }
 0xcc4   :  { %v564_v43 = vadd.f32 %v562_v42, %v471_v34 }
 0xcc6   :  { %1140 = vtanh.f32 %v564_v43 }
 0xcd0   :  { %v1141_v44 = vpop.eup %1140 }
 0xcd1   :  { %568 = vrot.lane.b32.xlu1 %v1141_v44, %s1242_s2 }
 0xd43   :  { %v569_v46 = vpop.permute.xlu1 %568 }
 0xd44   :  { %v571_v48 = vmul.f32 %v569_v46, %v566_v45 }
 0xd46   :  { %v573_v49 = vadd.f32 %v572_v47, %v571_v48 }
 0xd48   :  { %577 = vrot.lane.b32.xlu0 %v573_v49, %s1242_s2 }
 0xdba   :  { %v578_v50 = vpop.permute.xlu0 %577 }
 0xdbb   :  { %1028 = vmatmul.mubr.msk.f32.vlgmr.msra.gmra.mrb[4].mxu1 %vm54_vm1, %v578_v50 }
 0xdbc   :  { %1096 = vmatpush3.bf16.msra.mxu1 %v1294_v5  ;;  %1049 = vmatprep.mubr.msk.f32.mxu1 %vm1239_vm0, %v1240_v1 }
 0xdbd   :  { %1097 = vmatprep.subr.bf16.mxu1 %v1238_v0 }
 0xdc0   :  { %1099 = vmatpush3.bf16.msra.mxu1 %v1301_v8 }
 0xe8e   :  { %v647_v51 = vpop.f32.mrb[4].mxu1 }
 0xe8f   :  { %v658_v52 = vadd.f32 %v647_v51, %v1317_v9  ;;  %v1029_v53 = vpop.f32.mrb[5].mxu1  ;;  %v651_v55 = vadd.f32 %v647_v51, %v575_v54 }
 0xe91   :  { %660 = vrot.lane.b32.xlu1 %v658_v52, %s1241_s13  ;;  %v919_v56 = vmul.f32 -1.442695, %v651_v55 }
 0xe93   :  { %1142 = vpow2.f32 %v919_v56 }
 0xe9d   :  { %v1143_v57 = vpop.eup %1142 }
 0xe9e   :  { %v655_v58 = vadd.f32 1.0, %v1143_v57 }
 0xea0   :  { %1144 = vrcp.f32 %v655_v58 }
 0xeaa   :  { %v1145_v5 = vpop.eup %1144 }
 0xeab   :  { %v670_v61 = vsub.f32 1.0, %v1145_v5  ;;  %v676_v63 = vmul.f32 %v1145_v5, %v573_v49 }
 0xf03   :  { %v661_v59 = vpop.permute.xlu1 %660 }
 0xf04   :  { %v663_v1 = vmul.f32 %v1145_v5, %v661_v59 }
 0xf06   :  { %665 = vrot.lane.b32.xlu0 %v663_v1, %s1241_s13 }
 0xf78   :  { %v666_v0 = vpop.permute.xlu0 %665 }
 0xf79   :  { %v668_v8 = vadd.f32 %v666_v0, %v575_v54 }
 0xf7b   :  { %1146 = vtanh.f32 %v668_v8 }
 0xf85   :  { %v1147_v60 = vpop.eup %1146 }
 0xf86   :  { %672 = vrot.lane.b32.xlu1 %v1147_v60, %s1242_s2 }
 0xff8   :  { %v673_v62 = vpop.permute.xlu1 %672 }
 0xff9   :  { %v675_v2 = vmul.f32 %v673_v62, %v670_v61 }
 0xffb   :  { %v677_v3 = vadd.f32 %v676_v63, %v675_v2 }
 0xffd   :  { %681 = vrot.lane.b32.xlu0 %v677_v3, %s1242_s2 }
0x106f   :  { %v682_v4 = vpop.permute.xlu0 %681 }
0x1070   :  { %1039 = vmatmul.mubr.msk.f32.vlgmr.msra.gmra.mrb[6].mxu0 %vm54_vm1, %v682_v4 }
0x1143   :  { %v751_v6 = vpop.f32.mrb[6].mxu0 }
0x1144   :  { %v762_v7 = vadd.f32 %v751_v6, %v1317_v9  ;;  %v1040_v10 = vpop.f32.mrb[7].mxu0  ;;  %v755_v12 = vadd.f32 %v751_v6, %v679_v11 }
0x1146   :  { %764 = vrot.lane.b32.xlu1 %v762_v7, %s1241_s13  ;;  %v921_v13 = vmul.f32 -1.442695, %v755_v12 }
0x1148   :  { %1148 = vpow2.f32 %v921_v13 }
0x1152   :  { %v1149_v14 = vpop.eup %1148 }
0x1153   :  { %v759_v15 = vadd.f32 1.0, %v1149_v14 }
0x1155   :  { %1150 = vrcp.f32 %v759_v15 }
0x115f   :  { %v1151_v16 = vpop.eup %1150 }
0x1160   :  { %v774_v22 = vsub.f32 1.0, %v1151_v16  ;;  %v780_v24 = vmul.f32 %v1151_v16, %v677_v3 }
0x11b8   :  { %v765_v17 = vpop.permute.xlu1 %764 }
0x11b9   :  { %v767_v18 = vmul.f32 %v1151_v16, %v765_v17 }
0x11bb   :  { %769 = vrot.lane.b32.xlu0 %v767_v18, %s1241_s13 }
0x122d   :  { %v770_v19 = vpop.permute.xlu0 %769 }
0x122e   :  { %v772_v20 = vadd.f32 %v770_v19, %v679_v11 }
0x1230   :  { %1152 = vtanh.f32 %v772_v20 }
0x123a   :  { %v1153_v21 = vpop.eup %1152 }
0x123b   :  { %776 = vrot.lane.b32.xlu1 %v1153_v21, %s1242_s2 }
0x12ad   :  { %v777_v23 = vpop.permute.xlu1 %776 }
0x12ae   :  { %v779_v25 = vmul.f32 %v777_v23, %v774_v22 }
0x12b0   :  { %v781_v26 = vadd.f32 %v780_v24, %v779_v25 }
0x12b2   :  { %785 = vrot.lane.b32.xlu0 %v781_v26, %s1242_s2 }
0x1324   :  { %v786_v27 = vpop.permute.xlu0 %785 }
0x1325   :  { %1050 = vmatmul.mubr.msk.f32.vlgmr.msra.gmra.mrb[6].mxu1 %vm54_vm1, %v786_v27 }
0x13f8   :  { %v855_v28 = vpop.f32.mrb[6].mxu1 }
0x13f9   :  { %v866_v29 = vadd.f32 %v855_v28, %v1317_v9  ;;  %v1051_v30 = vpop.f32.mrb[7].mxu1  ;;  %v859_v32 = vadd.f32 %v855_v28, %v783_v31 }
0x13fb   :  { %868 = vrot.lane.b32.xlu1 %v866_v29, %s1241_s13  ;;  %v923_v33 = vmul.f32 -1.442695, %v859_v32 }
0x13fd   :  { %1154 = vpow2.f32 %v923_v33 }
0x1407   :  { %v1155_v34 = vpop.eup %1154 }
0x1408   :  { %v863_v35 = vadd.f32 1.0, %v1155_v34 }
0x140a   :  { %1156 = vrcp.f32 %v863_v35 }
0x1414   :  { %v1157_v36 = vpop.eup %1156 }
0x1415   :  { %v878_v9 = vsub.f32 1.0, %v1157_v36  ;;  %v884_v43 = vmul.f32 %v1157_v36, %v781_v26 }
0x146d   :  { %v869_v37 = vpop.permute.xlu1 %868 }
0x146e   :  { %v871_v38 = vmul.f32 %v1157_v36, %v869_v37 }
0x1470   :  { %873 = vrot.lane.b32.xlu0 %v871_v38, %s1241_s13 }
0x14e2   :  { %v874_v39 = vpop.permute.xlu0 %873 }
0x14e3   :  { %v876_v40 = vadd.f32 %v874_v39, %v783_v31 }
0x14e5   :  { %1158 = vtanh.f32 %v876_v40 }
0x14ef   :  { %v1159_v41 = vpop.eup %1158 }
0x14f0   :  { %880 = vrot.lane.b32.xlu1 %v1159_v41, %s1242_s2 }
0x1562   :  { %v881_v42 = vpop.permute.xlu1 %880 }
0x1563   :  { %v883_v44 = vmul.f32 %v881_v42, %v878_v9 }
0x1565   :  { %v885_v45 = vadd.f32 %v884_v43, %v883_v44 }
0x1567   :  { %887 = vrot.lane.b32.xlu0 %v885_v45, %s1242_s2 }
0x15d9   :  { %v888_v46 = vpop.permute.xlu0 %887 }
0x15da   :  { %891 = vst.msk [vmem:[#allocation7] sm:$0x3] %vm890_vm2, %v888_v46 }
0x15db   :  { %1215 = shalt.err (!%p1212_p6)
}
0x15dc   :  { %s1216_s19 = scalar_lea.hbm %s1409_s3, 32 }
0x15dd   :  { %p1217_p7 = scmp.ne.s32.totalorder %s1409_s3, %s1216_s19  ;;  %p1220_p8 = scmp.lt.u32.totalorder %s1216_s19, %s1409_s3 }
0x15df   :  { %p1222_p9 = pnand %p1220_p8, %p1217_p7 }
0x15e1   :  { %1225 = shalt.err (!%p1222_p9)
}
0x15e2   :  { %901 = dma.vmem_to_hbm [thread:$0]  %s899_s15, 32, %s1409_s3, [#allocation4]  }
0x15e3   :  { %1230 = dma.done.wait [#allocation4], 32  }
0x15e4   :  { %1231 = vsyncadd [#allocation4], 4294967264 }
0x15e5   :  { %905 = vsyncpa [#allocation3], 1 }
0x15e6   :  { %906 = vsyncpa [#allocation6], 1 }
0x15e7   :  { %907 = vsyncpa [#allocation4], 1 }

</bundles_post_ra>
